<compile_context>
chip_gen: v7x
topology: tpu7x:2x2x1
jax: 0.10.0
libtpu: 0.0.40
codegen_flags: <defaults>
</compile_context>

<pallas_src>
import jax
import jax.numpy as jnp
from jax.experimental import pallas as pl
from jax.experimental.pallas import tpu as pltpu


def _round_up(x, m):
    return ((x + m - 1) // m) * m


def _actor_kernel(x_ref,               # (TB, S)    bf16
                  w1_ref, b1_ref,      # (S,  Hp) bf16, (1, Hp) f32
                  w2_ref, b2_ref,      # (Hp, Hp) bf16, (1, Hp) f32
                  w3_ref, b3_ref,      # (Hp, Ap) bf16, (1, Ap) f32
                  mu_ref):             # (TB, Ap)   f32
    x = x_ref[...]
    # Layer 1: bf16 MXU matmul, f32 accumulate / bias / ReLU.
    h = jnp.dot(x, w1_ref[...], preferred_element_type=jnp.float32) + b1_ref[...]
    h = jnp.maximum(h, 0.0)
    # Layer 2.
    h = jnp.dot(h.astype(w2_ref.dtype), w2_ref[...],
                preferred_element_type=jnp.float32) + b2_ref[...]
    h = jnp.maximum(h, 0.0)
    # Layer 3 + sigmoid = recip(1 + exp(-x)); exp and approx-recip run on the EUP.
    logits = jnp.dot(h.astype(w3_ref.dtype), w3_ref[...],
                     preferred_element_type=jnp.float32) + b3_ref[...]
    mu_ref[...] = pl.reciprocal(1.0 + jnp.exp(-logits),
                                approx=True).astype(mu_ref.dtype)


def actor_forward(states, params, std, action_dim=None, *, block_b=1024):
    """Returns (mu, std_arr) = parameters of TruncatedNormal(mu, std).

    states: (B, state_dim) f32.
    params: padded, pre-transposed params from init_actor_params.
    std:    python float / scalar.
    """
    w1, b1, w2, b2, w3, b3 = params
    B, S = states.shape
    Hp = w1.shape[1]
    Ap = w3.shape[1]
    A = Ap if action_dim is None else action_dim

    # Batch tiling: TB multiple of 16 (bf16 sublane packing); sized from
    # ceil(B / n_steps) so padding is < 16 rows; >= 2 steps when the batch
    # allows so the "parallel" axis can feed both TensorCores on v7x.
    block_b = max(16, _round_up(block_b, 16))
    n_steps = max(1, -(-B // block_b))
    if n_steps == 1 and B >= 32:
        n_steps = 2
    TB = _round_up(-(-B // n_steps), 16)
    Bp = _round_up(B, TB)

    x = states.astype(jnp.bfloat16)
    if Bp != B:
        x = jnp.pad(x, ((0, Bp - B), (0, 0)))

    # VMEM budget: single-buffered weights + double-buffered activation
    # stream + f32 hidden intermediates, with headroom; kept inside v7x's
    # 64 MiB physical VMEM.
    weight_bytes = (S * Hp + Hp * Hp + Hp * Ap) * 2 + (2 * Hp + Ap) * 4
    stream_bytes = 2 * TB * S * 2 + 2 * TB * Ap * 4
    interm_bytes = 4 * TB * Hp * 4
    vmem_limit = int(1.25 * (weight_bytes + stream_bytes + interm_bytes)) + (8 << 20)
    vmem_limit = max(32 << 20, min(vmem_limit, 64 << 20))

    # Weights/biases: constant block index -> DMA'd once, VMEM-resident across
    # the whole grid; single-buffered (double-buffering a constant block only
    # doubles its VMEM footprint).
    resident = lambda shape: pl.BlockSpec(shape, lambda i: (0, 0),
                                          pipeline_mode=pl.Buffered(1))

    mu = pl.pallas_call(
        _actor_kernel,
        out_shape=jax.ShapeDtypeStruct((Bp, Ap), jnp.float32),
        grid=(Bp // TB,),
        in_specs=[
            pl.BlockSpec((TB, S), lambda i: (i, 0)),   # activation stream
            resident((S, Hp)), resident((1, Hp)),
            resident((Hp, Hp)), resident((1, Hp)),
            resident((Hp, Ap)), resident((1, Ap)),
        ],
        out_specs=pl.BlockSpec((TB, Ap), lambda i: (i, 0)),
        compiler_params=pltpu.CompilerParams(
            dimension_semantics=("parallel",),          # 2-TC sharding on v7x
            vmem_limit_bytes=vmem_limit),
    )(x, w1, b1, w2, b2, w3, b3)

    mu = mu[:B, :A]
    # Constant broadcast kept out of the kernel (plain XLA, fuses with caller).
    std_arr = jnp.full((B, A), std, jnp.float32)
    return mu, std_arr


def init_actor_params(key, state_dim, action_dim, hidden_dim):
    """Deterministic init.

    Returns (padded_params, logical_params):
      padded_params:  pre-transposed (in, out) bf16 weights / (1, out) f32
        biases with hidden/action dims zero-padded to multiples of 128 so all
        matmul tiles and output stores are lane-dense; the zero padding
        provably contributes nothing to the real outputs.
      logical_params: unpadded weights for the pure-JAX reference.
    """
    k1, k2, k3 = jax.random.split(key, 3)
    Hp = _round_up(hidden_dim, 128)
    Ap = _round_up(action_dim, 128)

    def lin(k, fan_in, fan_out):
        w = jax.random.normal(k, (fan_in, fan_out), jnp.float32) / jnp.sqrt(fan_in)
        b = jnp.zeros((fan_out,), jnp.float32)
        return w, b

    w1, b1 = lin(k1, state_dim, hidden_dim)
    w2, b2 = lin(k2, hidden_dim, hidden_dim)
    w3, b3 = lin(k3, hidden_dim, action_dim)

    def pad_w(w, rows, cols):
        out = jnp.zeros((rows, cols), jnp.float32)
        out = out.at[:w.shape[0], :w.shape[1]].set(w)
        return out.astype(jnp.bfloat16)

    def pad_b(b, cols):
        return jnp.zeros((1, cols), jnp.float32).at[0, :b.shape[0]].set(b)

    padded = (pad_w(w1, state_dim, Hp), pad_b(b1, Hp),
              pad_w(w2, Hp, Hp),        pad_b(b2, Hp),
              pad_w(w3, Hp, Ap),        pad_b(b3, Ap))
    logical = (w1.astype(jnp.bfloat16), b1,
               w2.astype(jnp.bfloat16), b2,
               w3.astype(jnp.bfloat16), b3)
    return padded, logical


def _reference(states, logical_params, std):
    """Pure-JAX reference using the same bf16-operand / f32-accumulate math."""
    w1, b1, w2, b2, w3, b3 = logical_params
    x = states.astype(jnp.bfloat16)
    h = jnp.maximum(jnp.dot(x, w1, preferred_element_type=jnp.float32) + b1, 0.0)
    h = jnp.maximum(jnp.dot(h.astype(jnp.bfloat16), w2,
                            preferred_element_type=jnp.float32) + b2, 0.0)
    mu = jax.nn.sigmoid(jnp.dot(h.astype(jnp.bfloat16), w3,
                                preferred_element_type=jnp.float32) + b3)
    return mu, jnp.ones_like(mu) * std


if __name__ == "__main__":
    key = jax.random.PRNGKey(0)
    k_x, k_p = jax.random.split(key)

    B, state_dim, action_dim, hidden_dim = 8, 16, 8, 32
    states = jax.random.normal(k_x, (B, state_dim), jnp.float32)
    padded_params, logical_params = init_actor_params(
        k_p, state_dim, action_dim, hidden_dim)
    std = 0.2

    mu, std_arr = actor_forward(states, padded_params, std, action_dim)
    jax.block_until_ready((mu, std_arr))

    mu_ref, std_ref = _reference(states, logical_params, std)
    assert mu.shape == (B, action_dim) and std_arr.shape == (B, action_dim)
    assert jnp.allclose(mu, mu_ref, atol=2e-3, rtol=2e-3), (
        float(jnp.max(jnp.abs(mu - mu_ref))))
    assert jnp.allclose(std_arr, std_ref, atol=1e-6)
    print("KERNEL_OK")
</pallas_src>

<mosaic_0001>
module attributes {stable_mosaic.version = 11 : i64} {
  func.func @_actor_kernel(%arg0: i32, %arg1: memref<16x16xbf16, #tpu.memory_space<vmem>>, %arg2: memref<16x128xbf16, #tpu.memory_space<vmem>>, %arg3: memref<1x128xf32, #tpu.memory_space<vmem>>, %arg4: memref<128x128xbf16, #tpu.memory_space<vmem>>, %arg5: memref<1x128xf32, #tpu.memory_space<vmem>>, %arg6: memref<128x128xbf16, #tpu.memory_space<vmem>>, %arg7: memref<1x128xf32, #tpu.memory_space<vmem>>, %arg8: memref<16x128xf32, #tpu.memory_space<vmem>>) attributes {dimension_semantics = [#tpu.dimension_semantics<parallel>], iteration_bounds = array<i64: 1>, scalar_prefetch = 0 : i64, scratch_operands = 0 : i64, tpu.core_type = #tpu.core_type<tc>, window_params = [{transform_indices = @transform_0, window_bounds = array<i64: 16, 16>}, {pipeline_mode = #tpu.pipeline_mode<synchronous>, transform_indices = @transform_1, window_bounds = array<i64: 16, 128>}, {pipeline_mode = #tpu.pipeline_mode<synchronous>, transform_indices = @transform_2, window_bounds = array<i64: 1, 128>}, {pipeline_mode = #tpu.pipeline_mode<synchronous>, transform_indices = @transform_3, window_bounds = array<i64: 128, 128>}, {pipeline_mode = #tpu.pipeline_mode<synchronous>, transform_indices = @transform_4, window_bounds = array<i64: 1, 128>}, {pipeline_mode = #tpu.pipeline_mode<synchronous>, transform_indices = @transform_5, window_bounds = array<i64: 128, 128>}, {pipeline_mode = #tpu.pipeline_mode<synchronous>, transform_indices = @transform_6, window_bounds = array<i64: 1, 128>}, {transform_indices = @transform_7, window_bounds = array<i64: 16, 128>}]} {
    %c0 = arith.constant 0 : index
    %c0_0 = arith.constant 0 : index
    %0 = vector.load %arg1[%c0, %c0_0] : memref<16x16xbf16, #tpu.memory_space<vmem>>, vector<16x16xbf16>
    %c0_1 = arith.constant 0 : index
    %c0_2 = arith.constant 0 : index
    %1 = vector.load %arg2[%c0_1, %c0_2] : memref<16x128xbf16, #tpu.memory_space<vmem>>, vector<16x128xbf16>
    %cst = arith.constant dense<0.000000e+00> : vector<16x128xf32>
    %2 = tpu.matmul %0, %1, %cst {dimension_numbers = #tpu.dot_dimension_numbers<[1], [0], [0], [1], [0, 0, 1, 1], [], []>} : vector<16x16xbf16>, vector<16x128xbf16>, vector<16x128xf32> -> vector<16x128xf32>
    %c0_3 = arith.constant 0 : index
    %c0_4 = arith.constant 0 : index
    %3 = vector.load %arg3[%c0_3, %c0_4] : memref<1x128xf32, #tpu.memory_space<vmem>>, vector<1x128xf32>
    %4 = vector.broadcast %3 : vector<1x128xf32> to vector<16x128xf32>
    %5 = arith.addf %2, %4 : vector<16x128xf32>
    %cst_5 = arith.constant 0.000000e+00 : f32
    %6 = vector.broadcast %cst_5 : f32 to vector<16x128xf32>
    %7 = arith.maximumf %5, %6 : vector<16x128xf32>
    %8 = arith.truncf %7 : vector<16x128xf32> to vector<16x128xbf16>
    %c0_6 = arith.constant 0 : index
    %c0_7 = arith.constant 0 : index
    %9 = vector.load %arg4[%c0_6, %c0_7] : memref<128x128xbf16, #tpu.memory_space<vmem>>, vector<128x128xbf16>
    %cst_8 = arith.constant dense<0.000000e+00> : vector<16x128xf32>
    %10 = tpu.matmul %8, %9, %cst_8 {dimension_numbers = #tpu.dot_dimension_numbers<[1], [0], [0], [1], [0, 0, 1, 1], [], []>} : vector<16x128xbf16>, vector<128x128xbf16>, vector<16x128xf32> -> vector<16x128xf32>
    %c0_9 = arith.constant 0 : index
    %c0_10 = arith.constant 0 : index
    %11 = vector.load %arg5[%c0_9, %c0_10] : memref<1x128xf32, #tpu.memory_space<vmem>>, vector<1x128xf32>
    %12 = vector.broadcast %11 : vector<1x128xf32> to vector<16x128xf32>
    %13 = arith.addf %10, %12 : vector<16x128xf32>
    %cst_11 = arith.constant 0.000000e+00 : f32
    %14 = vector.broadcast %cst_11 : f32 to vector<16x128xf32>
    %15 = arith.maximumf %13, %14 : vector<16x128xf32>
    %16 = arith.truncf %15 : vector<16x128xf32> to vector<16x128xbf16>
    %c0_12 = arith.constant 0 : index
    %c0_13 = arith.constant 0 : index
    %17 = vector.load %arg6[%c0_12, %c0_13] : memref<128x128xbf16, #tpu.memory_space<vmem>>, vector<128x128xbf16>
    %cst_14 = arith.constant dense<0.000000e+00> : vector<16x128xf32>
    %18 = tpu.matmul %16, %17, %cst_14 {dimension_numbers = #tpu.dot_dimension_numbers<[1], [0], [0], [1], [0, 0, 1, 1], [], []>} : vector<16x128xbf16>, vector<128x128xbf16>, vector<16x128xf32> -> vector<16x128xf32>
    %c0_15 = arith.constant 0 : index
    %c0_16 = arith.constant 0 : index
    %19 = vector.load %arg7[%c0_15, %c0_16] : memref<1x128xf32, #tpu.memory_space<vmem>>, vector<1x128xf32>
    %20 = vector.broadcast %19 : vector<1x128xf32> to vector<16x128xf32>
    %21 = arith.addf %18, %20 : vector<16x128xf32>
    %cst_17 = arith.constant 0.000000e+00 : f32
    %22 = vector.broadcast %cst_17 : f32 to vector<16x128xf32>
    %23 = arith.subf %22, %21 : vector<16x128xf32>
    %24 = math.exp %23 : vector<16x128xf32>
    %cst_18 = arith.constant 1.000000e+00 : f32
    %25 = vector.broadcast %cst_18 : f32 to vector<16x128xf32>
    %26 = arith.addf %25, %24 : vector<16x128xf32>
    %27 = tpu.reciprocal %26 {approx = true} : vector<16x128xf32> -> vector<16x128xf32>
    %c0_19 = arith.constant 0 : index
    %c0_20 = arith.constant 0 : index
    %28 = vector.load %arg8[%c0_19, %c0_20] : memref<16x128xf32, #tpu.memory_space<vmem>>, vector<16x128xf32>
    tpu.vector_store %arg8[%c0_19, %c0_20], %27 {strides = array<i32>} : memref<16x128xf32, #tpu.memory_space<vmem>>, vector<16x128xf32>,
    return
  }
  func.func @transform_0(%arg0: i32) -> (i32, i32) {
    %c0_i32 = arith.constant 0 : i32
    %c0_i32_0 = arith.constant 0 : i32
    return %arg0, %c0_i32 : i32, i32
  }
  func.func @transform_1(%arg0: i32) -> (i32, i32) {
    %c0_i32 = arith.constant 0 : i32
    %c0_i32_0 = arith.constant 0 : i32
    %c0_i32_1 = arith.constant 0 : i32
    return %c0_i32, %c0_i32_0 : i32, i32
  }
  func.func @transform_2(%arg0: i32) -> (i32, i32) {
    %c0_i32 = arith.constant 0 : i32
    %c0_i32_0 = arith.constant 0 : i32
    %c0_i32_1 = arith.constant 0 : i32
    return %c0_i32, %c0_i32_0 : i32, i32
  }
  func.func @transform_3(%arg0: i32) -> (i32, i32) {
    %c0_i32 = arith.constant 0 : i32
    %c0_i32_0 = arith.constant 0 : i32
    %c0_i32_1 = arith.constant 0 : i32
    return %c0_i32, %c0_i32_0 : i32, i32
  }
  func.func @transform_4(%arg0: i32) -> (i32, i32) {
    %c0_i32 = arith.constant 0 : i32
    %c0_i32_0 = arith.constant 0 : i32
    %c0_i32_1 = arith.constant 0 : i32
    return %c0_i32, %c0_i32_0 : i32, i32
  }
  func.func @transform_5(%arg0: i32) -> (i32, i32) {
    %c0_i32 = arith.constant 0 : i32
    %c0_i32_0 = arith.constant 0 : i32
    %c0_i32_1 = arith.constant 0 : i32
    return %c0_i32, %c0_i32_0 : i32, i32
  }
  func.func @transform_6(%arg0: i32) -> (i32, i32) {
    %c0_i32 = arith.constant 0 : i32
    %c0_i32_0 = arith.constant 0 : i32
    %c0_i32_1 = arith.constant 0 : i32
    return %c0_i32, %c0_i32_0 : i32, i32
  }
  func.func @transform_7(%arg0: i32) -> (i32, i32) {
    %c0_i32 = arith.constant 0 : i32
    %c0_i32_0 = arith.constant 0 : i32
    return %arg0, %c0_i32 : i32, i32
  }
}

</mosaic_0001>

<bundles_post_ra>
// kernel: tpu_custom_call.1
= control target key start
LH: loop header
LB: loop body
LE: loop exit
PB: predicated region body
PF: predicated region fallthrough
CT: control target
= control target key end

     0   :  { %12 = vsyncpa [#allocation3], 0  ;;  %s820_s0 = inlined_call_operand.hbm [shape: bf16[16,16], index: 0, kind: input, shape index: {}]   ;;  %s821_s1 = inlined_call_operand.hbm [shape: bf16[16,128], index: 1, kind: input, shape index: {}]   ;;  %s822_s2 = inlined_call_operand.vmem [shape: f32[1,128], index: 2, kind: input, shape index: {}]   ;;  %s823_s3 = inlined_call_operand.hbm [shape: bf16[128,128], index: 3, kind: input, shape index: {}]   ;;  %s824_s4 = inlined_call_operand.vmem [shape: f32[1,128], index: 4, kind: input, shape index: {}]   ;;  %s825_s5 = inlined_call_operand.hbm [shape: bf16[128,128], index: 5, kind: input, shape index: {}]   ;;  %s826_s6 = inlined_call_operand.vmem [shape: f32[1,128], index: 6, kind: input, shape index: {}]   ;;  %s827_s7 = inlined_call_operand.hbm [shape: f32[16,128], index: 7, kind: output, shape index: {}]  }
   0x1   :  { %13 = vsyncpa [#allocation6], 0 }
   0x2   :  { %14 = vsyncpa [#allocation9], 0 }
   0x3   :  { %15 = vsyncpa [#allocation4], 0  ;;  %s654_s24 = smov [#allocation5]   ;;  %s655_s26 = smov [#allocation2]  }
   0x4   :  { %s33_s25 = sshll.u32 %s654_s24, 4  ;;  %s21_s27 = sshll.u32 %s655_s26, 4  ;;  %s34_s25 = int_to_ptr.vmem [resolvable:$true] %s33_s25  ;;  %s705_s27 = int_to_ptr.vmem [resolvable:$true] %s21_s27 }
   0x5   :  { %s536_s30 = scalar_lea.hbm %s821_s1, 128 }
   0x6   :  { %p537_p0 = scmp.ne.s32.totalorder %s821_s1, %s536_s30  ;;  %p540_p1 = scmp.lt.u32.totalorder %s536_s30, %s821_s1 }
   0x8   :  { %p542_p2 = pnand %p540_p1, %p537_p0 }
   0xa   :  { %545 = shalt.err (!%p542_p2)
}
   0xb   :  { %s546_s12 = scalar_lea.vmem %s34_s25, 128  ;;  %p551_p4 = scmp.lt.s32.totalorder %s34_s25, %s34_s25 }
   0xc   :  { %p547_p3 = scmp.ne.s32.totalorder %s34_s25, %s546_s12  ;;  %p552_p5 = scmp.lt.s32.totalorder %s546_s12, %s546_s12 }
   0xe   :  { %p553_p6 = por %p552_p5, %p551_p4 }
  0x10   :  { %p554_p7 = pnand %p553_p6, %p547_p3 }
  0x12   :  { %557 = shalt.err (!%p554_p7)
}
  0x13   :  { %s656_s13 = smov 64   ;;  %s657_s14 = smov 4  }
  0x14   :  { %39 = dma.hbm_to_vmem [thread:$0]  %s821_s1, 128, %s34_s25, [#allocation6], %s656_s13, %s656_s13, %s657_s14  }
  0x15   :  { %s558_s19 = scalar_lea.hbm %s820_s0, 128 }
  0x16   :  { %p559_p8 = scmp.ne.s32.totalorder %s820_s0, %s558_s19  ;;  %p562_p9 = scmp.lt.u32.totalorder %s558_s19, %s820_s0 }
  0x18   :  { %p564_p10 = pnand %p562_p9, %p559_p8 }
  0x1a   :  { %567 = shalt.err (!%p564_p10)
}
  0x1b   :  { %s568_s24 = scalar_lea.vmem %s705_s27, 128  ;;  %p573_p12 = scmp.lt.s32.totalorder %s705_s27, %s705_s27 }
  0x1c   :  { %p569_p11 = scmp.ne.s32.totalorder %s705_s27, %s568_s24  ;;  %p574_p13 = scmp.lt.s32.totalorder %s568_s24, %s568_s24 }
  0x1e   :  { %p575_p0 = por %p574_p13, %p573_p12 }
  0x20   :  { %p576_p1 = pnand %p575_p0, %p569_p11 }
  0x22   :  { %579 = shalt.err (!%p576_p1)
}
  0x23   :  { %27 = dma.hbm_to_vmem [thread:$0]  %s820_s0, 128, %s705_s27, [#allocation3], %s656_s13, %s656_s13, %s657_s14  }
  0x24   :  { %s658_s26 = smov [#allocation7]   ;;  %s659_s29 = smov [#allocation8]  }
  0x25   :  { %s47_s28 = sshll.u32 %s658_s26, 4  ;;  %s61_s30 = sshll.u32 %s659_s29, 4  ;;  %s48_s28 = int_to_ptr.vmem [resolvable:$true] %s47_s28  ;;  %s742_s30 = int_to_ptr.vmem [resolvable:$true] %s61_s30 }
  0x26   :  { %s580_s10 = scalar_lea.hbm %s823_s3, 1024 }
  0x27   :  { %p581_p2 = scmp.ne.s32.totalorder %s823_s3, %s580_s10  ;;  %p584_p3 = scmp.lt.u32.totalorder %s580_s10, %s823_s3 }
  0x29   :  { %p586_p4 = pnand %p584_p3, %p581_p2 }
  0x2b   :  { %589 = shalt.err (!%p586_p4)
}
  0x2c   :  { %s590_s0 = scalar_lea.vmem %s48_s28, 1024  ;;  %p595_p6 = scmp.lt.s32.totalorder %s48_s28, %s48_s28 }
  0x2d   :  { %p591_p5 = scmp.ne.s32.totalorder %s48_s28, %s590_s0  ;;  %p596_p7 = scmp.lt.s32.totalorder %s590_s0, %s590_s0 }
  0x2f   :  { %p597_p8 = por %p596_p7, %p595_p6 }
  0x31   :  { %p598_p9 = pnand %p597_p8, %p591_p5 }
  0x33   :  { %601 = shalt.err (!%p598_p9)
}
  0x34   :  { %53 = dma.hbm_to_vmem [thread:$0]  %s823_s3, 1024, %s48_s28, [#allocation6], %s656_s13, %s656_s13, %s657_s14  }
  0x35   :  { %s602_s20 = scalar_lea.hbm %s825_s5, 1024 }
  0x36   :  { %p603_p10 = scmp.ne.s32.totalorder %s825_s5, %s602_s20  ;;  %p606_p11 = scmp.lt.u32.totalorder %s602_s20, %s825_s5 }
  0x38   :  { %p608_p12 = pnand %p606_p11, %p603_p10 }
  0x3a   :  { %611 = shalt.err (!%p608_p12)
}
  0x3b   :  { %s612_s1 = scalar_lea.vmem %s742_s30, 1024  ;;  %p617_p0 = scmp.lt.s32.totalorder %s742_s30, %s742_s30 }
  0x3c   :  { %p613_p13 = scmp.ne.s32.totalorder %s742_s30, %s612_s1  ;;  %p618_p1 = scmp.lt.s32.totalorder %s612_s1, %s612_s1 }
  0x3e   :  { %p619_p2 = por %p618_p1, %p617_p0 }
  0x40   :  { %p620_p3 = pnand %p619_p2, %p613_p13 }
  0x42   :  { %623 = shalt.err (!%p620_p3)
}
  0x43   :  { %67 = dma.hbm_to_vmem [thread:$0]  %s825_s5, 1024, %s742_s30, [#allocation9], %s656_s13, %s656_s13, %s657_s14  }
  0x44   :  { %646 = dma.done.wait [#allocation3], 128  }
  0x45   :  { %647 = vsyncadd [#allocation3], 4294967168 }
  0x46   :  { %648 = dma.done.wait [#allocation6], 1152  }
  0x47   :  { %649 = vsyncadd [#allocation6], 4294966144 }
  0x48   :  { %650 = dma.done.wait [#allocation9], 1024  }
  0x49   :  { %651 = vsyncadd [#allocation9], 4294966272  ;;  %v660_v0 = vmov 0.0   ;;  %vm661_vm0 = vmmov 0   ;;  %v510_v1 = vld [vmem:[#allocation5] sm:$0xff]   ;;  %v511_v2 = vld [vmem:[#allocation2] sm:$0xff]  }
  0x4a   :  { %453 = vmatprep.subr.bf16.mxu0 %v660_v0  ;;  %455 = vmatprep.mubr.msk.bf16.mxu0 %vm661_vm0, %v660_v0  ;;  %vm105_vm1 = vcmask 130048   ;;  %v512_v3 = vld [vmem:[#allocation7] sm:$0xff]   ;;  %v513_v4 = vld [vmem:[#allocation7 + $0x8] sm:$0xff]   ;;  %v514_v5 = vld [vmem:[#allocation7 + $0x10] sm:$0xff]  }
  0x4b   :  { %459 = vmatprep.subr.bf16.mxu1 %v660_v0  ;;  %475 = vmatprep.mubr.msk.bf16.mxu1 %vm661_vm0, %v660_v0  ;;  %v515_v6 = vld [vmem:[#allocation7 + $0x18] sm:$0xff]   ;;  %v516_v7 = vld [vmem:[#allocation7 + $0x20] sm:$0xff]   ;;  %v517_v8 = vld [vmem:[#allocation7 + $0x28] sm:$0xff]  }
  0x4c   :  { %454 = vmatpush3.bf16.msra.mxu0 %v510_v1  ;;  %460 = vmatpush3.bf16.msra.mxu1 %v512_v3  ;;  %v518_v9 = vld [vmem:[#allocation7 + $0x30] sm:$0xff]   ;;  %v519_v10 = vld [vmem:[#allocation7 + $0x38] sm:$0xff]   ;;  %v520_v11 = vld [vmem:[#allocation8] sm:$0xff]  }
  0x4d   :  { %479 = vmatprep.subr.bf16.mxu0 %v660_v0  ;;  %461 = vmatprep.subr.bf16.mxu1 %v660_v0  ;;  %v521_v12 = vld [vmem:[#allocation8 + $0x8] sm:$0xff]   ;;  %v522_v13 = vld [vmem:[#allocation8 + $0x10] sm:$0xff]   ;;  %v523_v14 = vld [vmem:[#allocation8 + $0x18] sm:$0xff]  }
  0x4e   :  { %v524_v15 = vld [vmem:[#allocation8 + $0x20] sm:$0xff]   ;;  %v525_v16 = vld [vmem:[#allocation8 + $0x28] sm:$0xff]   ;;  %v411_v17 = vld [vmem:[%s822_s2] ss:$0 sm:$0xff] }
  0x4f   :  { %456 = vmatmul.mubr.msk.bf16.vlgmr.msra.gmra.mrb[0].mxu0 %vm105_vm1, %v511_v2  ;;  %v526_v27 = vld [vmem:[#allocation8 + $0x30] sm:$0xff]   ;;  %v527_v28 = vld [vmem:[#allocation8 + $0x38] sm:$0xff]  }
  0x50   :  { %495 = vmatprep.mubr.msk.bf16.mxu0 %vm661_vm0, %v660_v0  ;;  %462 = vmatpush3.bf16.msra.mxu1 %v513_v4  ;;  %v415_v29 = vld [vmem:[%s824_s4] ss:$0 sm:$0xff]  ;;  %s662_s4 = smov [#allocation10]  }
  0x51   :  { %463 = vmatprep.subr.bf16.mxu1 %v660_v0  ;;  %480 = vmatpush3.bf16.msra.mxu0 %v520_v11  ;;  %v424_v39 = vld [vmem:[%s826_s6] ss:$0 sm:$0xff]  ;;  %s397_s6 = sshll.u32 %s662_s4, 4  ;;  %s398_s6 = int_to_ptr.vmem [resolvable:$true] %s397_s6 }
  0x52   :  { %481 = vmatprep.subr.bf16.mxu0 %v660_v0  ;;  %s624_s29 = scalar_lea.vmem %s398_s6, 256  ;;  %p629_p5 = scmp.lt.s32.totalorder %s398_s6, %s398_s6 }
  0x53   :  { %p625_p4 = scmp.ne.s32.totalorder %s398_s6, %s624_s29  ;;  %p630_p6 = scmp.lt.s32.totalorder %s624_s29, %s624_s29 }
  0x54   :  { %464 = vmatpush3.bf16.msra.mxu1 %v514_v5 }
  0x55   :  { %465 = vmatprep.subr.bf16.mxu1 %v660_v0  ;;  %482 = vmatpush3.bf16.msra.mxu0 %v521_v12  ;;  %p631_p7 = por %p630_p6, %p629_p5 }
  0x56   :  { %483 = vmatprep.subr.bf16.mxu0 %v660_v0 }
  0x57   :  { %p632_p8 = pnand %p631_p7, %p625_p4 }
  0x58   :  { %466 = vmatpush3.bf16.msra.mxu1 %v515_v6 }
  0x59   :  { %467 = vmatprep.subr.bf16.mxu1 %v660_v0  ;;  %484 = vmatpush3.bf16.msra.mxu0 %v522_v13 }
  0x5a   :  { %485 = vmatprep.subr.bf16.mxu0 %v660_v0 }
  0x5c   :  { %468 = vmatpush3.bf16.msra.mxu1 %v516_v7 }
  0x5d   :  { %469 = vmatprep.subr.bf16.mxu1 %v660_v0  ;;  %486 = vmatpush3.bf16.msra.mxu0 %v523_v14 }
  0x5e   :  { %487 = vmatprep.subr.bf16.mxu0 %v660_v0 }
  0x60   :  { %470 = vmatpush3.bf16.msra.mxu1 %v517_v8 }
  0x61   :  { %471 = vmatprep.subr.bf16.mxu1 %v660_v0  ;;  %488 = vmatpush3.bf16.msra.mxu0 %v524_v15 }
  0x62   :  { %489 = vmatprep.subr.bf16.mxu0 %v660_v0 }
  0x64   :  { %472 = vmatpush3.bf16.msra.mxu1 %v518_v9 }
  0x65   :  { %473 = vmatprep.subr.bf16.mxu1 %v660_v0  ;;  %490 = vmatpush3.bf16.msra.mxu0 %v525_v16 }
  0x66   :  { %491 = vmatprep.subr.bf16.mxu0 %v660_v0 }
  0x68   :  { %474 = vmatpush3.bf16.msra.mxu1 %v519_v10 }
  0x69   :  { %492 = vmatpush3.bf16.msra.mxu0 %v526_v27 }
  0x6a   :  { %493 = vmatprep.subr.bf16.mxu0 %v660_v0 }
  0x6d   :  { %494 = vmatpush3.bf16.msra.mxu0 %v527_v28 }
 0x122   :  { %v143_v18 = vpop.f32.mrb[0].mxu0 }
 0x123   :  { %v144_v19 = vadd.f32 %v411_v17, %v143_v18  ;;  %v457_v20 = vpop.f32.mrb[1].mxu0 }
 0x124   :  { %v146_v21 = vpop.f32.mrb[2].mxu0 }
 0x125   :  { %v147_v22 = vadd.f32 %v411_v17, %v146_v21  ;;  %v458_v23 = vpop.f32.mrb[3].mxu0  ;;  %v150_v24 = vmax.f32 %v144_v19, 0.0 }
 0x127   :  { %v151_v25 = vmax.f32 %v147_v22, 0.0 }
 0x129   :  { %v152_v26 = vpack.c.bf16 %v151_v25, %v150_v24 }
 0x12b   :  { %476 = vmatmul.mubr.bf16.vlgmr.msra.gmra.mrb[0].mxu1 %v152_v26 }
 0x1fe   :  { %v258_v30 = vpop.f32.mrb[0].mxu1 }
 0x1ff   :  { %v259_v31 = vadd.f32 %v415_v29, %v258_v30  ;;  %v477_v32 = vpop.f32.mrb[1].mxu1 }
 0x200   :  { %v261_v33 = vpop.f32.mrb[2].mxu1 }
 0x201   :  { %v262_v34 = vadd.f32 %v415_v29, %v261_v33  ;;  %v478_v35 = vpop.f32.mrb[3].mxu1  ;;  %v265_v36 = vmax.f32 %v259_v31, 0.0 }
 0x203   :  { %v266_v37 = vmax.f32 %v262_v34, 0.0 }
 0x205   :  { %v267_v38 = vpack.c.bf16 %v266_v37, %v265_v36 }
 0x207   :  { %496 = vmatmul.mubr.bf16.vlgmr.msra.gmra.mrb[4].mxu0 %v267_v38 }
 0x2da   :  { %v373_v40 = vpop.f32.mrb[4].mxu0 }
 0x2db   :  { %v374_v41 = vadd.f32 %v424_v39, %v373_v40  ;;  %v497_v42 = vpop.f32.mrb[5].mxu0 }
 0x2dc   :  { %v376_v43 = vpop.f32.mrb[6].mxu0 }
 0x2dd   :  { %v380_v44 = vsub.f32 0.0, %v374_v41  ;;  %v377_v45 = vadd.f32 %v424_v39, %v376_v43  ;;  %v498_v46 = vpop.f32.mrb[7].mxu0 }
 0x2df   :  { %v382_v47 = vmul.f32 1.442695, %v380_v44  ;;  %v381_v48 = vsub.f32 0.0, %v377_v45 }
 0x2e1   :  { %528 = vpow2.f32 %v382_v47  ;;  %v384_v49 = vmul.f32 1.442695, %v381_v48 }
 0x2e3   :  { %530 = vpow2.f32 %v384_v49 }
 0x2eb   :  { %v529_v50 = vpop.eup %528 }
 0x2ec   :  { %v386_v51 = vadd.f32 1.0, %v529_v50 }
 0x2ed   :  { %v531_v52 = vpop.eup %530 }
 0x2ee   :  { %532 = vrcp.f32 %v386_v51  ;;  %v387_v53 = vadd.f32 1.0, %v531_v52 }
 0x2f0   :  { %534 = vrcp.f32 %v387_v53 }
 0x2f8   :  { %v533_v54 = vpop.eup %532 }
 0x2f9   :  { %390 = vst [vmem:[#allocation10] sm:$0xff] %v533_v54 }
 0x2fa   :  { %v535_v55 = vpop.eup %534 }
 0x2fb   :  { %391 = vst [vmem:[#allocation10 + $0x8] sm:$0xff] %v535_v55 }
 0x2fc   :  { %635 = shalt.err (!%p632_p8)
}
 0x2fd   :  { %s636_s9 = scalar_lea.hbm %s827_s7, 256 }
 0x2fe   :  { %p637_p9 = scmp.ne.s32.totalorder %s827_s7, %s636_s9  ;;  %p640_p10 = scmp.lt.u32.totalorder %s636_s9, %s827_s7 }
 0x300   :  { %p642_p11 = pnand %p640_p10, %p637_p9 }
 0x302   :  { %645 = shalt.err (!%p642_p11)
}
 0x303   :  { %s663_s16 = smov 128   ;;  %s664_s0 = smov 8  }
 0x304   :  { %403 = dma.vmem_to_hbm [thread:$0]  %s398_s6, 256, %s827_s7, [#allocation4], %s663_s16, %s663_s16, %s664_s0  }
 0x305   :  { %652 = dma.done.wait [#allocation4], 256  }
 0x306   :  { %653 = vsyncadd [#allocation4], 4294967040 }
 0x307   :  { %407 = vsyncpa [#allocation3], 1 }
 0x308   :  { %408 = vsyncpa [#allocation6], 1 }
 0x309   :  { %409 = vsyncpa [#allocation9], 1 }
 0x30a   :  { %410 = vsyncpa [#allocation4], 1 }

</bundles_post_ra>
